<compile_context>
chip_gen: v7x
topology: tpu7x:2x2x1
jax: 0.10.0
libtpu: 0.0.40
codegen_flags: <defaults>
</compile_context>

<pallas_src>
import jax
import jax.numpy as jnp
from jax import lax
from jax.experimental import pallas as pl
from jax.experimental.pallas import tpu as pltpu


# contract the last dim of both operands: A (m,k) x B (n,k) -> (m,n)
_NT_DIMS = (((1,), (1,)), ((), ()))


def _linkpred_kernel(xi_ref, xj_ref,
                     w0_ref, b0_ref, w1_ref, b1_ref, w2_ref, b2_ref,
                     o_ref):
    # Elementwise product of the two node embeddings in f32 on the VPU
    # (inputs may arrive f32 or bf16; upcast on load).
    x = xi_ref[...].astype(jnp.float32) * xj_ref[...].astype(jnp.float32)   # (tm, C)
    xb = x.astype(jnp.bfloat16)   # bf16 MXU feed; accumulation stays f32.

    # Layer 0: Linear(C -> H) + ReLU, feature-major:
    #   h[f, t] = sum_c w0[f, c] * x[t, c]   -> (H, tm)
    h = lax.dot_general(w0_ref[...], xb, _NT_DIMS,
                        preferred_element_type=jnp.float32)
    h = jnp.maximum(h + b0_ref[...], 0.0)        # b0 is (H, 1): broadcasts along lanes
    # TODO(synk): dropout omitted (module evaluated in inference mode -> identity).

    # Layer 1: Linear(H -> H) + ReLU.
    h = jnp.dot(w1_ref[...], h.astype(jnp.bfloat16),
                preferred_element_type=jnp.float32)
    h = jnp.maximum(h + b1_ref[...], 0.0)

    # Layer 2: Linear(H -> O) + sigmoid.  (O, tm) result is lane-dense.
    z = jnp.dot(w2_ref[...], h.astype(jnp.bfloat16),
                preferred_element_type=jnp.float32) + b2_ref[...]
    o_ref[...] = jax.nn.sigmoid(z).astype(o_ref.dtype)


def _round_up(x, m):
    return (x + m - 1) // m * m


def _tpu_vmem_capacity_bytes():
    """Physical VMEM per TensorCore; conservative (v7x) fallback if the query fails."""
    try:
        return int(pltpu.get_tpu_info().vmem_capacity_bytes)
    except Exception:
        return 64 << 20


def link_predictor(x_i, x_j, params, *, tm=None, vmem_limit_bytes=None):
    """params = (w0, b0, w1, b1, w2, b2) in PyTorch Linear layout:
         wK: (out_features, in_features),  bK: (out_features, 1).
    x_i / x_j are streamed as given (f32 or bf16 — no wrapper cast/pad passes).
    Returns sigmoid probabilities of shape (N, out_features), f32."""
    N, C = x_i.shape
    assert x_j.shape == (N, C)
    w0, b0, w1, b1, w2, b2 = params
    H = w0.shape[0]
    O = w2.shape[0]

    in_itemsize = jnp.dtype(x_i.dtype).itemsize
    lanes_c = _round_up(C, 128)            # (tm, C) VMEM blocks lane-pad C up to 128
    vmem_cap = _tpu_vmem_capacity_bytes()

    # Activation VMEM per row: 2 inputs x 2 pipeline buffers x padded lanes.
    bytes_per_row = 2 * 2 * lanes_c * in_itemsize
    act_budget = vmem_cap // 4             # leave room for output/hidden/weights/misc
    tm_cap = max(128, (act_budget // bytes_per_row) // 128 * 128)

    if tm is None:
        # As big as the VMEM budget allows, but keep >= 2 grid steps when the
        # batch is large enough (v7x dual TensorCore + pipeline depth).
        tm = max(128, min(tm_cap, _round_up(pl.cdiv(N, 2), 128)))
    else:
        tm = max(128, min(_round_up(tm, 128), _round_up(N, 128), tm_cap))
    grid = (pl.cdiv(N, tm),)               # ragged tail handled by Pallas masking

    if vmem_limit_bytes is None:
        est = (2 * 2 * tm * lanes_c * in_itemsize          # x_i / x_j double buffers
               + 2 * _round_up(O, 8) * tm * 4               # lane-dense output double buffers
               + 4 * _round_up(H, 8) * tm * 4               # hidden-state temporaries (generous)
               + 4 * (H * C + H * H + O * H + 2 * H + O)    # weights + biases
               + (2 << 20))                                  # misc compiler scratch
        vmem_limit_bytes = int(min(max(est, 32 << 20), (vmem_cap * 3) // 4))

    # Weights in bf16 (tiny arrays; halves weight VMEM, native MXU dtype).
    w0b, w1b, w2b = (w.astype(jnp.bfloat16) for w in (w0, w1, w2))
    b0f, b1f, b2f = (b.astype(jnp.float32) for b in (b0, b1, b2))

    act_spec = pl.BlockSpec((tm, C), lambda i: (i, 0))
    res = lambda shape: pl.BlockSpec(shape, lambda i: (0, 0))   # VMEM-resident params

    cost = pl.CostEstimate(
        flops=int(2 * N * (C * H + H * H + H * O) + N * C),
        transcendentals=int(N * O),
        bytes_accessed=int(2 * N * C * in_itemsize + N * O * 4
                           + 2 * (H * C + H * H + O * H) + 4 * (2 * H + O)),
    )

    out = pl.pallas_call(
        _linkpred_kernel,
        out_shape=jax.ShapeDtypeStruct((O, N), jnp.float32),
        grid_spec=pltpu.PrefetchScalarGridSpec(
            num_scalar_prefetch=0,
            grid=grid,
            in_specs=[
                act_spec, act_spec,               # x_i, x_j tiles
                res((H, C)), res((H, 1)),         # layer 0
                res((H, H)), res((H, 1)),         # layer 1
                res((O, H)), res((O, 1)),         # layer 2
            ],
            out_specs=pl.BlockSpec((O, tm), lambda i: (0, i)),
        ),
        compiler_params=pltpu.CompilerParams(
            dimension_semantics=("parallel",),
            vmem_limit_bytes=vmem_limit_bytes,
        ),
        cost_estimate=cost,
    )(x_i, x_j, w0b, b0f, w1b, b1f, w2b, b2f)

    # (O, N) -> (N, O).  For O == 1 this is a negligible N*4-byte copy.
    return out.T


def init_params(key, in_channels, hidden_channels, out_channels):
    """Deterministic PyTorch-Linear-style uniform init; weights stored (out, in)."""
    def linear(key, fan_in, fan_out):
        kw, kb = jax.random.split(key)
        bound = 1.0 / jnp.sqrt(fan_in)
        w = jax.random.uniform(kw, (fan_out, fan_in), jnp.float32, -bound, bound)
        b = jax.random.uniform(kb, (fan_out, 1), jnp.float32, -bound, bound)
        return w, b

    k0, k1, k2 = jax.random.split(key, 3)
    w0, b0 = linear(k0, in_channels, hidden_channels)
    w1, b1 = linear(k1, hidden_channels, hidden_channels)
    w2, b2 = linear(k2, hidden_channels, out_channels)
    return (w0, b0, w1, b1, w2, b2)


def link_predictor_ref(x_i, x_j, params, matmul_dtype=jnp.float32):
    """Pure-JAX reference.  matmul_dtype=bf16 mimics the kernel's MXU feed
    (f32 accumulation either way)."""
    w0, b0, w1, b1, w2, b2 = params
    x = x_i.astype(jnp.float32) * x_j.astype(jnp.float32)

    def lin(v, w, b):
        y = jnp.dot(v.astype(matmul_dtype), w.astype(matmul_dtype).T,
                    preferred_element_type=jnp.float32)
        return y + b.T

    h = jnp.maximum(lin(x, w0, b0), 0.0)
    h = jnp.maximum(lin(h, w1, b1), 0.0)
    return jax.nn.sigmoid(lin(h, w2, b2))


if __name__ == "__main__":
    # num_layers=3, in_channels=32, hidden_channels=32, out_channels=1, eval mode.
    # Ragged N=300 exercises the masked-tail path (no wrapper padding anymore).
    N, C, H, O = 300, 32, 32, 1

    key = jax.random.PRNGKey(0)
    k_xi, k_xj, k_p = jax.random.split(key, 3)
    x_i = jax.random.normal(k_xi, (N, C), jnp.float32)
    x_j = jax.random.normal(k_xj, (N, C), jnp.float32)
    params = init_params(k_p, C, H, O)

    # Auto tile (tm=256 -> 2 steps), small tile (tm=128 -> 3 steps, ragged tail),
    # and a single oversized tile (tm=384 -> 1 step, whole-block masking).
    out_auto = jax.block_until_ready(link_predictor(x_i, x_j, params))
    out_a = jax.block_until_ready(link_predictor(x_i, x_j, params, tm=128))
    out_b = jax.block_until_ready(link_predictor(x_i, x_j, params, tm=384))

    ref_bf16 = link_predictor_ref(x_i, x_j, params, matmul_dtype=jnp.bfloat16)
    ref_f32 = link_predictor_ref(x_i, x_j, params, matmul_dtype=jnp.float32)

    assert out_auto.shape == (N, O) and out_a.shape == (N, O) and out_b.shape == (N, O)
    # Tiling must not change per-row math.
    assert jnp.allclose(out_auto, out_a, atol=1e-6, rtol=0)
    assert jnp.allclose(out_auto, out_b, atol=1e-6, rtol=0)
    # Match the reference using the same bf16 MXU feed.
    assert jnp.allclose(out_auto, ref_bf16, atol=1e-4, rtol=0), \
        float(jnp.max(jnp.abs(out_auto - ref_bf16)))
    # Loose sanity check against full-f32 math (bf16 matmul rounding only).
    assert jnp.allclose(out_auto, ref_f32, atol=3e-2, rtol=0), \
        float(jnp.max(jnp.abs(out_auto - ref_f32)))

    # Tiny-batch path (N < 128, single partially-masked block).
    Ns = 77
    xs_i = jax.random.normal(jax.random.PRNGKey(1), (Ns, C), jnp.float32)
    xs_j = jax.random.normal(jax.random.PRNGKey(2), (Ns, C), jnp.float32)
    out_s = jax.block_until_ready(link_predictor(xs_i, xs_j, params))
    ref_s = link_predictor_ref(xs_i, xs_j, params, matmul_dtype=jnp.bfloat16)
    assert out_s.shape == (Ns, O)
    assert jnp.allclose(out_s, ref_s, atol=1e-4, rtol=0)

    print("KERNEL_OK")
</pallas_src>

<mosaic_0001>
module attributes {stable_mosaic.version = 11 : i64} {
  func.func @_linkpred_kernel(%arg0: i32, %arg1: memref<256x32xf32, #tpu.memory_space<vmem>>, %arg2: memref<256x32xf32, #tpu.memory_space<vmem>>, %arg3: memref<32x32xbf16, #tpu.memory_space<vmem>>, %arg4: memref<32x1xf32, #tpu.memory_space<vmem>>, %arg5: memref<32x32xbf16, #tpu.memory_space<vmem>>, %arg6: memref<32x1xf32, #tpu.memory_space<vmem>>, %arg7: memref<1x32xbf16, #tpu.memory_space<vmem>>, %arg8: memref<1x1xf32, #tpu.memory_space<vmem>>, %arg9: memref<1x256xf32, #tpu.memory_space<vmem>>) attributes {dimension_semantics = [#tpu.dimension_semantics<parallel>], iteration_bounds = array<i64: 2>, scalar_prefetch = 0 : i64, scratch_operands = 0 : i64, tpu.core_type = #tpu.core_type<tc>, window_params = [{transform_indices = @transform_0, window_bounds = array<i64: 256, 32>}, {transform_indices = @transform_1, window_bounds = array<i64: 256, 32>}, {pipeline_mode = #tpu.pipeline_mode<synchronous>, transform_indices = @transform_2, window_bounds = array<i64: 32, 32>}, {pipeline_mode = #tpu.pipeline_mode<synchronous>, transform_indices = @transform_3, window_bounds = array<i64: 32, 1>}, {pipeline_mode = #tpu.pipeline_mode<synchronous>, transform_indices = @transform_4, window_bounds = array<i64: 32, 32>}, {pipeline_mode = #tpu.pipeline_mode<synchronous>, transform_indices = @transform_5, window_bounds = array<i64: 32, 1>}, {pipeline_mode = #tpu.pipeline_mode<synchronous>, transform_indices = @transform_6, window_bounds = array<i64: 1, 32>}, {pipeline_mode = #tpu.pipeline_mode<synchronous>, transform_indices = @transform_7, window_bounds = array<i64: 1, 1>}, {transform_indices = @transform_8, window_bounds = array<i64: 1, 256>}]} {
    %c0 = arith.constant 0 : index
    %c0_0 = arith.constant 0 : index
    %0 = vector.load %arg1[%c0, %c0_0] : memref<256x32xf32, #tpu.memory_space<vmem>>, vector<256x32xf32>
    %c0_1 = arith.constant 0 : index
    %c0_2 = arith.constant 0 : index
    %1 = vector.load %arg2[%c0_1, %c0_2] : memref<256x32xf32, #tpu.memory_space<vmem>>, vector<256x32xf32>
    %2 = arith.mulf %0, %1 : vector<256x32xf32>
    %3 = arith.truncf %2 : vector<256x32xf32> to vector<256x32xbf16>
    %c0_3 = arith.constant 0 : index
    %c0_4 = arith.constant 0 : index
    %4 = vector.load %arg3[%c0_3, %c0_4] : memref<32x32xbf16, #tpu.memory_space<vmem>>, vector<32x32xbf16>
    %cst = arith.constant dense<0.000000e+00> : vector<32x256xf32>
    %5 = tpu.matmul %4, %3, %cst {dimension_numbers = #tpu.dot_dimension_numbers<[1], [1], [0], [0], [0, 0, 1, 0], [], []>} : vector<32x32xbf16>, vector<256x32xbf16>, vector<32x256xf32> -> vector<32x256xf32>
    %c0_5 = arith.constant 0 : index
    %c0_6 = arith.constant 0 : index
    %6 = vector.load %arg4[%c0_5, %c0_6] : memref<32x1xf32, #tpu.memory_space<vmem>>, vector<32x1xf32>
    %7 = vector.broadcast %6 : vector<32x1xf32> to vector<32x256xf32>
    %8 = arith.addf %5, %7 : vector<32x256xf32>
    %cst_7 = arith.constant 0.000000e+00 : f32
    %9 = vector.broadcast %cst_7 : f32 to vector<32x256xf32>
    %10 = arith.maximumf %8, %9 : vector<32x256xf32>
    %c0_8 = arith.constant 0 : index
    %c0_9 = arith.constant 0 : index
    %11 = vector.load %arg5[%c0_8, %c0_9] : memref<32x32xbf16, #tpu.memory_space<vmem>>, vector<32x32xbf16>
    %12 = arith.truncf %10 : vector<32x256xf32> to vector<32x256xbf16>
    %cst_10 = arith.constant dense<0.000000e+00> : vector<32x256xf32>
    %13 = tpu.matmul %11, %12, %cst_10 {dimension_numbers = #tpu.dot_dimension_numbers<[1], [0], [0], [1], [0, 0, 1, 1], [], []>} : vector<32x32xbf16>, vector<32x256xbf16>, vector<32x256xf32> -> vector<32x256xf32>
    %c0_11 = arith.constant 0 : index
    %c0_12 = arith.constant 0 : index
    %14 = vector.load %arg6[%c0_11, %c0_12] : memref<32x1xf32, #tpu.memory_space<vmem>>, vector<32x1xf32>
    %15 = vector.broadcast %14 : vector<32x1xf32> to vector<32x256xf32>
    %16 = arith.addf %13, %15 : vector<32x256xf32>
    %cst_13 = arith.constant 0.000000e+00 : f32
    %17 = vector.broadcast %cst_13 : f32 to vector<32x256xf32>
    %18 = arith.maximumf %16, %17 : vector<32x256xf32>
    %c0_14 = arith.constant 0 : index
    %c0_15 = arith.constant 0 : index
    %19 = vector.load %arg7[%c0_14, %c0_15] : memref<1x32xbf16, #tpu.memory_space<vmem>>, vector<1x32xbf16>
    %20 = arith.truncf %18 : vector<32x256xf32> to vector<32x256xbf16>
    %cst_16 = arith.constant dense<0.000000e+00> : vector<1x256xf32>
    %21 = tpu.matmul %19, %20, %cst_16 {dimension_numbers = #tpu.dot_dimension_numbers<[1], [0], [0], [1], [0, 0, 1, 1], [], []>} : vector<1x32xbf16>, vector<32x256xbf16>, vector<1x256xf32> -> vector<1x256xf32>
    %c0_17 = arith.constant 0 : index
    %c0_18 = arith.constant 0 : index
    %22 = vector.load %arg8[%c0_17, %c0_18] : memref<1x1xf32, #tpu.memory_space<vmem>>, vector<1x1xf32>
    %23 = vector.broadcast %22 : vector<1x1xf32> to vector<1x256xf32>
    %24 = arith.addf %21, %23 : vector<1x256xf32>
    %25 = arith.negf %24 : vector<1x256xf32>
    %26 = math.exp %25 : vector<1x256xf32>
    %cst_19 = arith.constant 1.000000e+00 : f32
    %27 = vector.broadcast %cst_19 : f32 to vector<1x256xf32>
    %28 = arith.addf %27, %26 : vector<1x256xf32>
    %29 = arith.divf %27, %28 : vector<1x256xf32>
    %c0_20 = arith.constant 0 : index
    %c0_21 = arith.constant 0 : index
    %30 = vector.load %arg9[%c0_20, %c0_21] : memref<1x256xf32, #tpu.memory_space<vmem>>, vector<1x256xf32>
    tpu.vector_store %arg9[%c0_20, %c0_21], %29 {strides = array<i32>} : memref<1x256xf32, #tpu.memory_space<vmem>>, vector<1x256xf32>,
    return
  }
  func.func @transform_0(%arg0: i32) -> (i32, i32) {
    %c0_i32 = arith.constant 0 : i32
    %c0_i32_0 = arith.constant 0 : i32
    return %arg0, %c0_i32 : i32, i32
  }
  func.func @transform_1(%arg0: i32) -> (i32, i32) {
    %c0_i32 = arith.constant 0 : i32
    %c0_i32_0 = arith.constant 0 : i32
    return %arg0, %c0_i32 : i32, i32
  }
  func.func @transform_2(%arg0: i32) -> (i32, i32) {
    %c0_i32 = arith.constant 0 : i32
    %c0_i32_0 = arith.constant 0 : i32
    %c0_i32_1 = arith.constant 0 : i32
    return %c0_i32, %c0_i32_0 : i32, i32
  }
  func.func @transform_3(%arg0: i32) -> (i32, i32) {
    %c0_i32 = arith.constant 0 : i32
    %c0_i32_0 = arith.constant 0 : i32
    %c0_i32_1 = arith.constant 0 : i32
    return %c0_i32, %c0_i32_0 : i32, i32
  }
  func.func @transform_4(%arg0: i32) -> (i32, i32) {
    %c0_i32 = arith.constant 0 : i32
    %c0_i32_0 = arith.constant 0 : i32
    %c0_i32_1 = arith.constant 0 : i32
    return %c0_i32, %c0_i32_0 : i32, i32
  }
  func.func @transform_5(%arg0: i32) -> (i32, i32) {
    %c0_i32 = arith.constant 0 : i32
    %c0_i32_0 = arith.constant 0 : i32
    %c0_i32_1 = arith.constant 0 : i32
    return %c0_i32, %c0_i32_0 : i32, i32
  }
  func.func @transform_6(%arg0: i32) -> (i32, i32) {
    %c0_i32 = arith.constant 0 : i32
    %c0_i32_0 = arith.constant 0 : i32
    %c0_i32_1 = arith.constant 0 : i32
    return %c0_i32, %c0_i32_0 : i32, i32
  }
  func.func @transform_7(%arg0: i32) -> (i32, i32) {
    %c0_i32 = arith.constant 0 : i32
    %c0_i32_0 = arith.constant 0 : i32
    %c0_i32_1 = arith.constant 0 : i32
    return %c0_i32, %c0_i32_0 : i32, i32
  }
  func.func @transform_8(%arg0: i32) -> (i32, i32) {
    %c0_i32 = arith.constant 0 : i32
    %c0_i32_0 = arith.constant 0 : i32
    return %c0_i32, %arg0 : i32, i32
  }
}

</mosaic_0001>

<bundles_post_ra>
// kernel: tpu_custom_call.1
= control target key start
LH: loop header
LB: loop body
LE: loop exit
PB: predicated region body
PF: predicated region fallthrough
CT: control target
= control target key end

     0   :  { %s1418_s0 = inlined_call_operand.vmem [shape: f32[300,32], index: 0, kind: input, shape index: {}]   ;;  %s1419_s1 = inlined_call_operand.vmem [shape: f32[300,32], index: 1, kind: input, shape index: {}]   ;;  %s1420_s2 = inlined_call_operand.vmem [shape: bf16[32,32], index: 2, kind: input, shape index: {}]   ;;  %s1421_s3 = inlined_call_operand.vmem [shape: f32[32,1], index: 3, kind: input, shape index: {}]   ;;  %s1422_s4 = inlined_call_operand.vmem [shape: bf16[32,32], index: 4, kind: input, shape index: {}]   ;;  %s1423_s5 = inlined_call_operand.vmem [shape: f32[32,1], index: 5, kind: input, shape index: {}]   ;;  %s1424_s6 = inlined_call_operand.vmem [shape: bf16[1,32], index: 6, kind: input, shape index: {}]   ;;  %s1425_s7 = inlined_call_operand.<no memory space> [shape: f32[1,1], index: 7, kind: input, shape index: {}]   ;;  %s1426_s8 = inlined_call_operand.hbm [shape: f32[1,300], index: 8, kind: output, shape index: {}]  }
   0x1   :  { %v13_v0 = vstv %s1425_s7 }
   0x2   :  { %14 = vst [vmem:[#allocation2] sm:$0x1] %v13_v0 }
   0x3   :  { %15 = vsyncpa [#allocation4], 0 }
   0x4   :  { %17 = vsyncpa [#allocation4 + $0x1], 0  ;;  %s1161_s29 = smov 0   ;;  %s1163_s30 = smov 0  }
   0x5   :  { %s1165_s9 = smov 0   ;;  %s1167_s10 = smov 0  }
   0x6 LB: > { %s1182_s7 = sadd.s32 4294967295, %s1108_s10   ;;  %s936_s11 = sadd.s32 4294967294, %s1108_s10   ;;  %s1108_s10 = sphi %s1167_s10, %s1432_s10   ;;  %s1104_s9 = sphi %s1165_s9, %s1431_s9   ;;  %s1100_s30 = sphi %s1163_s30, %s1430_s30   ;;  %s1096_s29 = sphi %s1161_s29, %s1429_s29  }
   0x7   : > { %s1186_s12 = sadd.s32 1, %s1108_s10   ;;  %s208_s13 = sadd.s32 1, %s1104_s9 }
   0x8   : > { %s205_s14 = ssub.s32 %s1108_s10, %s1186_s12  ;;  %p218_p0 = scmp.ne.s32.totalorder %s1104_s9, %s1100_s30 }
   0x9   : > { %p206_p1 = scmp.eq.s32.totalorder %s205_s14, 0  ;;  %p219_p2 = scmp.eq.s32.totalorder %s1182_s7, 1 }
   0xa   : > { %p224_p3 = scmp.ne.s32.totalorder %s1100_s30, %s1096_s29  ;;  %p225_p4 = scmp.eq.s32.totalorder %s936_s11, 1 }
   0xb   : > { %s1197_s15 = scalar_select %p206_p1, %s1104_s9, %s208_s13  }
   0xc   : > { %p1199_p5 = por %p219_p2, %p218_p0  ;;  %p1203_p6 = por %p225_p4, %p224_p3 }
   0xd   : > { %p939_p7 = scmp.ge.s32.totalorder %s1108_s10, 1  ;;  %p295_p8 = scmp.lt.s32.totalorder %s1108_s10, 3 }
   0xf   : > { %p296_p9 = pnand %p939_p7, %p295_p8 }
  0x10   : > { %s1210_s18 = sshll.u32 (!%p296_p9), %s1182_s7, 5  ;;  %v1216_v1 = vld [vmem:[%s1420_s2] sm:$0xff] (!%p296_p9)   ;;  %vm526_vm0 = vcmask (!%p296_p9), 261120   ;;  %v1110_v3 = vmov (!%p296_p9), 0   ;;  %v494_v4 = vld [vmem:[%s1421_s3 + $0x10] sm:$0xff] (!%p296_p9)  ;;  %v493_v5 = vld [vmem:[%s1421_s3 + $0x8] sm:$0xff] (!%p296_p9) }
  0x11   : > { %299 = sbr.rel (%p296_p9) target bundleno = 841 (0x349), region = 52  ;;  %p347_p10 = scmp.lt.s32.totalorder (!%p296_p9), %s1210_s18, 37  ;;  %v492_v2 = vld [vmem:[%s1421_s3] sm:$0xff] (!%p296_p9)  ;;  %980 = vmatprep.mubr.msk.bf16.mxu0 (!%p296_p9), %vm526_vm0, %v1216_v1  ;;  %1032 = vset.pattern.permute.xlu0 (!%p296_p9), %v1110_v3  ;;  %v495_v6 = vld [vmem:[%s1421_s3 + $0x18] sm:$0xff] (!%p296_p9)  ;;  %v651_v15 = vld [vmem:[%s1423_s5 + $0x8] sm:$0xff] (!%p296_p9) }
  0x12   : > { %498 = vperm.xlu0 (!%p296_p9), %1032, %v492_v2   ;;  %1033 = vset.pattern.permute.xlu1 (!%p296_p9), %v1110_v3  ;;  %v650_v10 = vld [vmem:[%s1423_s5] sm:$0xff] (!%p296_p9)  ;;  %v652_v35 = vld [vmem:[%s1423_s5 + $0x10] sm:$0xff] (!%p296_p9)  ;;  %v653_v42 = vld [vmem:[%s1423_s5 + $0x18] sm:$0xff] (!%p296_p9)  ;;  %s339_s27 = sand.u32 (!%p296_p9), 1, %s1100_s30  }
  0x13   : > { %508 = vperm.xlu1 (!%p296_p9), %1033, %v494_v4   ;;  %722 = vmatprep.mubr.bf16.mxu1 (!%p296_p9), %v1110_v3  ;;  %v756_v47 = vld [vmem:[#allocation2] sm:$0x1] (!%p296_p9)  ;;  %s940_s28 = sshll.u32 (!%p296_p9), %s339_s27, 1  ;;  %s1364_s13 = scalar_lea.sflag (!%p296_p9), [#allocation4], %s339_s27 }
  0x14   : > { %s341_s11 = scalar_lea.vmem (!%p296_p9), [#allocation3], %s940_s28 }
  0x16   : > { %503 = vperm.xlu0 (!%p296_p9), %1032, %v493_v5  }
  0x17   : > { %513 = vperm.xlu1 (!%p296_p9), %1033, %v495_v6  }
  0x18   : > { %s348_s23 = scalar_select %p347_p10, %s1210_s18, 37 }
  0x19   : > { %s957_s19 = sshll.u32 (%p1199_p5), %s1182_s7, 1 }
  0x1a   : > { %s942_s26 = sshll.u32 %s348_s23, 3  ;;  %656 = vperm.xlu0 %1032, %v650_v10   ;;  %s854_s20 = ssub.s32 (%p1199_p5), 3, %s957_s19 }
  0x1b   : > { %s1236_s14 = scalar_lea.vmem %s1418_s0, %s942_s26  ;;  %s1241_s21 = scalar_lea.vmem %s1419_s1, %s942_s26  ;;  %661 = vperm.xlu1 %1033, %v651_v15  }
  0x1c   : > { %v392_v7 = vld [vmem:[%s1236_s14 + $0x80] sm:$0xff]  ;;  %v393_v8 = vld [vmem:[%s1236_s14 + $0x88] sm:$0xff]  ;;  %v394_v19 = vld [vmem:[%s1236_s14 + $0x90] sm:$0xff]  ;;  %p855_p11 = scmp.lt.s32.totalorder (%p1199_p5), %s854_s20, 2 }
  0x1d   : > { %v424_v9 = vld [vmem:[%s1241_s21 + $0x80] sm:$0xff]  ;;  %v425_v11 = vld [vmem:[%s1241_s21 + $0x88] sm:$0xff]  ;;  %v395_v22 = vld [vmem:[%s1236_s14 + $0x98] sm:$0xff] }
  0x1e   : > { %v456_v12 = vmul.f32 %v424_v9, %v392_v7  ;;  %v376_v13 = vld [vmem:[%s1236_s14] sm:$0xff]  ;;  %v377_v14 = vld [vmem:[%s1236_s14 + $0x8] sm:$0xff]  ;;  %v457_v16 = vmul.f32 %v425_v11, %v393_v8  ;;  %v426_v23 = vld [vmem:[%s1241_s21 + $0x90] sm:$0xff]  ;;  %666 = vperm.xlu0 %1032, %v652_v35  }
  0x1f   : > { %v408_v17 = vld [vmem:[%s1241_s21] sm:$0xff]  ;;  %v409_v18 = vld [vmem:[%s1241_s21 + $0x8] sm:$0xff]  ;;  %v427_v24 = vld [vmem:[%s1241_s21 + $0x98] sm:$0xff]  ;;  %v458_v26 = vmul.f32 %v426_v23, %v394_v19  ;;  %671 = vperm.xlu1 %1033, %v653_v42  }
  0x20   : > { %v440_v20 = vmul.f32 %v408_v17, %v376_v13  ;;  %v441_v21 = vmul.f32 %v409_v18, %v377_v14  ;;  %v480_v25 = vpack.c.bf16 %v457_v16, %v456_v12  ;;  %v459_v27 = vmul.f32 %v427_v24, %v395_v22  ;;  %v378_v28 = vld [vmem:[%s1236_s14 + $0x10] sm:$0xff]  ;;  %v379_v29 = vld [vmem:[%s1236_s14 + $0x18] sm:$0xff]  ;;  %v396_v34 = vld [vmem:[%s1236_s14 + $0xa0] sm:$0xff] }
  0x21   : > { %v410_v30 = vld [vmem:[%s1241_s21 + $0x10] sm:$0xff]  ;;  %v411_v32 = vld [vmem:[%s1241_s21 + $0x18] sm:$0xff]  ;;  %v397_v38 = vld [vmem:[%s1236_s14 + $0xa8] sm:$0xff] }
  0x22   : > { %v472_v31 = vpack.c.bf16 %v441_v21, %v440_v20  ;;  %v442_v33 = vmul.f32 %v410_v30, %v378_v28  ;;  %984 = vmatprep.subr.msk.bf16.mxu0 %vm526_vm0, %v480_v25  ;;  %v481_v36 = vpack.c.bf16 %v459_v27, %v458_v26  ;;  %v443_v37 = vmul.f32 %v411_v32, %v379_v29  ;;  %v428_v39 = vld [vmem:[%s1241_s21 + $0xa0] sm:$0xff]  ;;  %v429_v40 = vld [vmem:[%s1241_s21 + $0xa8] sm:$0xff]  ;;  %v398_v55 = vld [vmem:[%s1236_s14 + $0xb0] sm:$0xff] }
  0x23   : > { %v460_v44 = vmul.f32 %v428_v39, %v396_v34  ;;  %v461_v45 = vmul.f32 %v429_v40, %v397_v38  ;;  %v380_v46 = vld [vmem:[%s1236_s14 + $0x20] sm:$0xff]  ;;  %v381_v48 = vld [vmem:[%s1236_s14 + $0x28] sm:$0xff]  ;;  %759 = vperm.xlu0 %1032, %v756_v47   ;;  %v399_v56 = vld [vmem:[%s1236_s14 + $0xb8] sm:$0xff] }
  0x24   : > { %v534_v41 = vsel %vm526_vm0, %v472_v31, 0  ;;  %v473_v43 = vpack.c.bf16 %v443_v37, %v442_v33  ;;  %v412_v49 = vld [vmem:[%s1241_s21 + $0x20] sm:$0xff]  ;;  %v413_v50 = vld [vmem:[%s1241_s21 + $0x28] sm:$0xff]  ;;  %v430_v57 = vld [vmem:[%s1241_s21 + $0xb0] sm:$0xff] }
  0x25   : > { %965 = vmatpush3.bf16.xpose.msra.mxu0 %v534_v41  ;;  %v482_v52 = vpack.c.bf16 %v461_v45, %v460_v44  ;;  %v444_v53 = vmul.f32 %v412_v49, %v380_v46  ;;  %v445_v54 = vmul.f32 %v413_v50, %v381_v48  ;;  %v431_v58 = vld [vmem:[%s1241_s21 + $0xb8] sm:$0xff]  ;;  %v462_v60 = vmul.f32 %v430_v57, %v398_v55  ;;  %v382_v62 = vld [vmem:[%s1236_s14 + $0x30] sm:$0xff]  ;;  %v400_v8 = vld [vmem:[%s1236_s14 + $0xc0] sm:$0xff] }
  0x26   : > { %985 = vmatprep.subr.msk.bf16.mxu0 %vm526_vm0, %v481_v36  ;;  %v537_v51 = vsel %vm526_vm0, %v473_v43, 0  ;;  %v463_v61 = vmul.f32 %v431_v58, %v399_v56  ;;  %v383_v63 = vld [vmem:[%s1236_s14 + $0x38] sm:$0xff]  ;;  %v414_v0 = vld [vmem:[%s1241_s21 + $0x30] sm:$0xff]  ;;  %v401_v9 = vld [vmem:[%s1236_s14 + $0xc8] sm:$0xff] }
  0x27   : > { %v474_v59 = vpack.c.bf16 %v445_v54, %v444_v53  ;;  %v415_v2 = vld [vmem:[%s1241_s21 + $0x38] sm:$0xff]  ;;  %v446_v6 = vmul.f32 %v414_v0, %v382_v62  ;;  %v432_v10 = vld [vmem:[%s1241_s21 + $0xc0] sm:$0xff]  ;;  %v433_v11 = vld [vmem:[%s1241_s21 + $0xc8] sm:$0xff] }
  0x28   : > { %v483_v5 = vpack.c.bf16 %v463_v61, %v462_v60  ;;  %v447_v7 = vmul.f32 %v415_v2, %v383_v63  ;;  %v464_v13 = vmul.f32 %v432_v10, %v400_v8  ;;  %v465_v14 = vmul.f32 %v433_v11, %v401_v9  ;;  %v384_v15 = vld [vmem:[%s1236_s14 + $0x40] sm:$0xff]  ;;  %v385_v16 = vld [vmem:[%s1236_s14 + $0x48] sm:$0xff]  ;;  %v402_v23 = vld [vmem:[%s1236_s14 + $0xd0] sm:$0xff] }
  0x29   : > { %v540_v4 = vsel %vm526_vm0, %v474_v59, 0  ;;  %v416_v17 = vld [vmem:[%s1241_s21 + $0x40] sm:$0xff]  ;;  %v417_v18 = vld [vmem:[%s1241_s21 + $0x48] sm:$0xff]  ;;  %v403_v24 = vld [vmem:[%s1236_s14 + $0xd8] sm:$0xff] }
  0x2a   : > { %v475_v12 = vpack.c.bf16 %v447_v7, %v446_v6  ;;  %v484_v20 = vpack.c.bf16 %v465_v14, %v464_v13  ;;  %v448_v21 = vmul.f32 %v416_v17, %v384_v15  ;;  %v449_v22 = vmul.f32 %v417_v18, %v385_v16  ;;  %v434_v25 = vld [vmem:[%s1241_s21 + $0xd0] sm:$0xff]  ;;  %v435_v26 = vld [vmem:[%s1241_s21 + $0xd8] sm:$0xff]  ;;  %v404_v38 = vld [vmem:[%s1236_s14 + $0xe0] sm:$0xff] }
  0x2b   : > { %v466_v28 = vmul.f32 %v434_v25, %v402_v23  ;;  %v467_v29 = vmul.f32 %v435_v26, %v403_v24  ;;  %v386_v30 = vld [vmem:[%s1236_s14 + $0x50] sm:$0xff]  ;;  %v387_v31 = vld [vmem:[%s1236_s14 + $0x58] sm:$0xff]  ;;  %v405_v39 = vld [vmem:[%s1236_s14 + $0xe8] sm:$0xff] }
  0x2c   : > { %v543_v19 = vsel %vm526_vm0, %v475_v12, 0  ;;  %v476_v27 = vpack.c.bf16 %v449_v22, %v448_v21  ;;  %v418_v32 = vld [vmem:[%s1241_s21 + $0x50] sm:$0xff]  ;;  %v419_v33 = vld [vmem:[%s1241_s21 + $0x58] sm:$0xff]  ;;  %v436_v40 = vld [vmem:[%s1241_s21 + $0xe0] sm:$0xff] }
  0x2d   : > { %967 = vmatpush3.bf16.xpose.msra.mxu0 %v537_v51  ;;  %v485_v35 = vpack.c.bf16 %v467_v29, %v466_v28  ;;  %v450_v36 = vmul.f32 %v418_v32, %v386_v30  ;;  %v451_v37 = vmul.f32 %v419_v33, %v387_v31  ;;  %v437_v41 = vld [vmem:[%s1241_s21 + $0xe8] sm:$0xff]  ;;  %v468_v43 = vmul.f32 %v436_v40, %v404_v38  ;;  %v388_v45 = vld [vmem:[%s1236_s14 + $0x60] sm:$0xff]  ;;  %v406_v53 = vld [vmem:[%s1236_s14 + $0xf0] sm:$0xff] }
  0x2e   : > { %986 = vmatprep.subr.msk.bf16.mxu0 %vm526_vm0, %v482_v52  ;;  %v546_v34 = vsel %vm526_vm0, %v476_v27, 0  ;;  %v469_v44 = vmul.f32 %v437_v41, %v405_v39  ;;  %v389_v46 = vld [vmem:[%s1236_s14 + $0x68] sm:$0xff]  ;;  %v420_v47 = vld [vmem:[%s1241_s21 + $0x60] sm:$0xff]  ;;  %v407_v54 = vld [vmem:[%s1236_s14 + $0xf8] sm:$0xff] }
  0x2f   : > { %v477_v42 = vpack.c.bf16 %v451_v37, %v450_v36  ;;  %v421_v48 = vld [vmem:[%s1241_s21 + $0x68] sm:$0xff]  ;;  %v452_v51 = vmul.f32 %v420_v47, %v388_v45  ;;  %v438_v55 = vld [vmem:[%s1241_s21 + $0xf0] sm:$0xff]  ;;  %v439_v56 = vld [vmem:[%s1241_s21 + $0xf8] sm:$0xff] }
  0x30   : > { %v486_v50 = vpack.c.bf16 %v469_v44, %v468_v43  ;;  %v453_v52 = vmul.f32 %v421_v48, %v389_v46  ;;  %v470_v58 = vmul.f32 %v438_v55, %v406_v53  ;;  %v471_v59 = vmul.f32 %v439_v56, %v407_v54  ;;  %v390_v60 = vld [vmem:[%s1236_s14 + $0x70] sm:$0xff]  ;;  %v391_v61 = vld [vmem:[%s1236_s14 + $0x78] sm:$0xff]  ;;  %v1035_v8 = vld [vmem:[%s1420_s2 + $0x8] sm:$0xff]  }
  0x31   : > { %v549_v49 = vsel %vm526_vm0, %v477_v42, 0  ;;  %v422_v62 = vld [vmem:[%s1241_s21 + $0x70] sm:$0xff]  ;;  %v423_v63 = vld [vmem:[%s1241_s21 + $0x78] sm:$0xff]  ;;  %v1036_v40 = vld [vmem:[%s1422_s4] sm:$0xff]  }
  0x32   : > { %v478_v57 = vpack.c.bf16 %v453_v52, %v452_v51  ;;  %v487_v2 = vpack.c.bf16 %v471_v59, %v470_v58  ;;  %v1037_v41 = vld [vmem:[%s1422_s4 + $0x8] sm:$0xff]  }
  0x34   : > { %v552_v0 = vsel %vm526_vm0, %v478_v57, 0 }
  0x35   : > { %969 = vmatpush3.bf16.xpose.msra.mxu0 %v540_v4  ;;  %v454_v4 = vmul.f32 %v422_v62, %v390_v60 }
  0x36   : > { %987 = vmatprep.subr.msk.bf16.mxu0 %vm526_vm0, %v483_v5  ;;  %v455_v5 = vmul.f32 %v423_v63, %v391_v61 }
  0x38   : > { %v479_v6 = vpack.c.bf16 %v455_v5, %v454_v4 }
  0x3a   : > { %v555_v7 = vsel %vm526_vm0, %v479_v6, 0 }
  0x3d   : > { %971 = vmatpush3.bf16.xpose.msra.mxu0 %v543_v19 }
  0x3e   : > { %988 = vmatprep.subr.msk.bf16.mxu0 %vm526_vm0, %v484_v20 }
  0x45   : > { %973 = vmatpush3.bf16.xpose.msra.mxu0 %v546_v34 }
  0x46   : > { %989 = vmatprep.subr.msk.bf16.mxu0 %vm526_vm0, %v485_v35 }
  0x4d   : > { %975 = vmatpush3.bf16.xpose.msra.mxu0 %v549_v49 }
  0x4e   : > { %990 = vmatprep.subr.msk.bf16.mxu0 %vm526_vm0, %v486_v50 }
  0x55   : > { %977 = vmatpush3.bf16.xpose.msra.mxu0 %v552_v0 }
  0x56   : > { %991 = vmatprep.subr.msk.bf16.mxu0 %vm526_vm0, %v487_v2 }
  0x5d   : > { %979 = vmatpush3.bf16.xpose.msra.mxu0 %v555_v7 }
  0x64   : > { %981 = vmatmul.mubr.msk.bf16.vlgmr.msra.gmra.mrb[0].mxu0 %vm526_vm0, %v1216_v1 }
  0x65   : > { %982 = vmatprep.mubr.msk.bf16.mxu0 %vm526_vm0, %v1035_v8 }
  0x6c   : > { %983 = vmatmul.mubr.msk.bf16.gmra.mrb[4].mxu0 %vm526_vm0, %v1035_v8 }
  0x91   : > { %v499_v9 = vpop.permute.xlu0 %498 }
  0x92   : > { %v509_v18 = vpop.permute.xlu1 %508 }
  0x95   : > { %v504_v13 = vpop.permute.xlu0 %503 }
  0x96   : > { %v514_v28 = vpop.permute.xlu1 %513 }
  0x99   : > { %v657_v42 = vpop.permute.xlu0 %656 }
  0x9a   : > { %v662_v46 = vpop.permute.xlu1 %661 }
  0x9d   : > { %v667_v57 = vpop.permute.xlu0 %666 }
  0x9e   : > { %v672_v61 = vpop.permute.xlu1 %671 }
 0x137   : > { %v615_v10 = vpop.f32.mrb[0].mxu0 }
 0x138   : > { %v616_v11 = vadd.f32 %v615_v10, %v499_v9  ;;  %v617_v12 = vpop.f32.mrb[1].mxu0 }
 0x139   : > { %v618_v14 = vadd.f32 %v617_v12, %v499_v9  ;;  %v619_v15 = vpop.f32.mrb[2].mxu0  ;;  %v762_v12 = vlaneseq }
 0x13a   : > { %v620_v16 = vadd.f32 %v619_v15, %v504_v13  ;;  %v621_v17 = vpop.f32.mrb[3].mxu0  ;;  %v634_v20 = vmax.f32 %v616_v11, 0.0  ;;  %v751_v11 = vld [vmem:[%s1424_s6] sm:$0x1]  ;;  %v760_v15 = vpop.permute.xlu0 %759 }
 0x13b   : > { %v622_v19 = vadd.f32 %v621_v17, %v504_v13  ;;  %v635_v22 = vmax.f32 %v618_v14, 0.0  ;;  %v763_v13 = vshrl.u32 %v762_v12, 7  ;;  %vm842_vm1 = vcmp.lt.s32.totalorder %v762_v12, 256 }
 0x13c   : > { %v636_v21 = vmax.f32 %v620_v16, 0.0 }
 0x13d   : > { %v637_v23 = vmax.f32 %v622_v19, 0.0  ;;  %v764_v14 = vsub.s32 0, %v763_v13 }
 0x13e   : > { %v646_v1 = vpack.c.bf16 %v636_v21, %v634_v20 }
 0x13f   : > { %v625_v24 = vpop.f32.mrb[4].mxu0  ;;  %v647_v25 = vpack.c.bf16 %v637_v23, %v635_v22  ;;  %v765_v16 = vrot.slane %v760_v15, %v764_v14 }
 0x140   : > { %v626_v26 = vadd.f32 %v625_v24, %v509_v18  ;;  %v627_v27 = vpop.f32.mrb[5].mxu0 }
 0x141   : > { %v628_v29 = vadd.f32 %v627_v27, %v509_v18  ;;  %v629_v30 = vpop.f32.mrb[6].mxu0  ;;  %690 = vmatprep.subr.bf16.mxu1 %v647_v25 }
 0x142   : > { %v630_v31 = vadd.f32 %v629_v30, %v514_v28  ;;  %v631_v32 = vpop.f32.mrb[7].mxu0  ;;  %691 = vmatpush1.bf16.msra.mxu1 %v646_v1  ;;  %v638_v34 = vmax.f32 %v626_v26, 0.0 }
 0x143   : > { %v632_v33 = vadd.f32 %v631_v32, %v514_v28  ;;  %v639_v36 = vmax.f32 %v628_v29, 0.0  ;;  %v1111_v28 = vmov 1966171168  }
 0x144   : > { %v640_v35 = vmax.f32 %v630_v31, 0.0  ;;  %v826_v29 = vunpack.c.l.s4 %v1111_v28 }
 0x145   : > { %v641_v37 = vmax.f32 %v632_v33, 0.0 }
 0x146   : > { %v648_v38 = vpack.c.bf16 %v640_v35, %v638_v34  ;;  %v827_v30 = vunpack.c.0.s8 %v826_v29 }
 0x147   : > { %v649_v39 = vpack.c.bf16 %v641_v37, %v639_v36 }
 0x148   : > { %v830_v32 = vsub.s32 %v827_v30, %v763_v13 }
 0x149   : > { %692 = vmatprep.subr.bf16.mxu1 %v649_v39 }
 0x14a   : > { %693 = vmatpush1.bf16.msra.mxu1 %v648_v38 }
 0x14d   : > { %951 = vmatmul.mubr.msk.bf16.vlgmr.msra.gmra.mrb[0].mxu1 %vm526_vm0, %v1036_v40 }
 0x14e   : > { %732 = vmatprep.mubr.bf16.mxu1 %v1110_v3 }
 0x155   : > { %952 = vmatmul.mubr.msk.bf16.gmra.mrb[4].mxu1 %vm526_vm0, %v1037_v41 }
 0x156   : > { %801 = vmatprep.mubr.bf16.mxu1 %v1110_v3 }
 0x220   : > { %v724_v43 = vpop.f32.mrb[0].mxu1 }
 0x221   : > { %v725_v44 = vadd.f32 %v724_v43, %v657_v42  ;;  %v726_v45 = vpop.f32.mrb[1].mxu1 }
 0x222   : > { %v727_v47 = vadd.f32 %v726_v45, %v657_v42  ;;  %v728_v48 = vpop.f32.mrb[2].mxu1 }
 0x223   : > { %v729_v49 = vadd.f32 %v728_v48, %v662_v46  ;;  %v730_v50 = vpop.f32.mrb[3].mxu1  ;;  %v743_v52 = vmax.f32 %v725_v44, 0.0 }
 0x224   : > { %v731_v51 = vadd.f32 %v730_v50, %v662_v46  ;;  %v744_v54 = vmax.f32 %v727_v47, 0.0 }
 0x225   : > { %v745_v53 = vmax.f32 %v729_v49, 0.0 }
 0x226   : > { %v746_v55 = vmax.f32 %v731_v51, 0.0 }
 0x227   : > { %v752_v56 = vpack.c.bf16 %v745_v53, %v743_v52 }
 0x228   : > { %v753_v58 = vpack.c.bf16 %v746_v55, %v744_v54  ;;  %v734_v59 = vpop.f32.mrb[4].mxu1 }
 0x229   : > { %v735_v60 = vadd.f32 %v734_v59, %v667_v57  ;;  %v736_v3 = vpop.f32.mrb[5].mxu1 }
 0x22a   : > { %v737_v62 = vadd.f32 %v736_v3, %v667_v57  ;;  %v738_v63 = vpop.f32.mrb[6].mxu1  ;;  %769 = vmatprep.subr.bf16.mxu1 %v753_v58 }
 0x22b   : > { %v739_v0 = vadd.f32 %v738_v63, %v672_v61  ;;  %v740_v2 = vpop.f32.mrb[7].mxu1  ;;  %770 = vmatpush1.bf16.msra.mxu1 %v752_v56  ;;  %v747_v5 = vmax.f32 %v735_v60, 0.0 }
 0x22c   : > { %v741_v4 = vadd.f32 %v740_v2, %v672_v61  ;;  %v748_v7 = vmax.f32 %v737_v62, 0.0 }
 0x22d   : > { %v749_v6 = vmax.f32 %v739_v0, 0.0 }
 0x22e   : > { %v750_v8 = vmax.f32 %v741_v4, 0.0 }
 0x22f   : > { %v754_v9 = vpack.c.bf16 %v749_v6, %v747_v5 }
 0x230   : > { %v755_v10 = vpack.c.bf16 %v750_v8, %v748_v7 }
 0x232   : > { %771 = vmatprep.subr.bf16.mxu1 %v755_v10 }
 0x233   : > { %772 = vmatpush1.bf16.msra.mxu1 %v754_v9 }
 0x236   : > { %953 = vmatmul.mubr.msk.bf16.vlgmr.msra.gmra.mrb[8].mxu1 %vm526_vm0, %v751_v11 }
 0x309   : > { %v803_v17 = vpop.f32.mrb[8].mxu1 }
 0x30a   : > { %v804_v18 = vadd.f32 %v803_v17, %v765_v16  ;;  %v805_v19 = vpop.f32.mrb[9].mxu1 }
 0x30b   : > { %v806_v20 = vadd.f32 %v805_v19, %v765_v16  ;;  %v807_v21 = vpop.f32.mrb[10].mxu1 }
 0x30c   : > { %v954_v22 = vmul.f32 -1.442695, %v804_v18  ;;  %v808_v23 = vpop.f32.mrb[11].mxu1 }
 0x30d   : > { %v955_v1 = vmul.f32 -1.442695, %v806_v20 }
 0x30e   : > { %1038 = vpow2.f32 %v954_v22 }
 0x30f   : > { %1040 = vpow2.f32 %v955_v1 }
 0x318   : > { %v1039_v24 = vpop.eup %1038 }
 0x319   : > { %v1041_v25 = vpop.eup %1040  ;;  %v816_v26 = vadd.f32 1.0, %v1039_v24 }
 0x31a   : > { %v817_v27 = vadd.f32 1.0, %v1041_v25 }
 0x31b   : > { %1042 = vrcp.f32 %v816_v26 }
 0x31c   : > { %1044 = vrcp.f32 %v817_v27 }
 0x325   : > { %v1043_v31 = vpop.eup %1042 }
 0x326   : > { %v1045_v33 = vpop.eup %1044 }
 0x327   : > { %v824_v34 = vcombine.low %v1043_v31, %v1045_v33  ;;  %852 = sbr.rel (!%p1199_p5) target bundleno = 841 (0x349), region = 56 }
 0x329   : > { %v831_v35 = vrot.slane %v824_v34, %v830_v32 }
 0x32b   : > { %v838_v36 = vrot.slane %v831_v35, %v830_v32 }
 0x32d   : > { %844 = vst.msk [vmem:[%s341_s11] sm:$0x3] %vm842_vm1, %v838_v36 }
 0x32e   : > { %s1434_s20 = smov (!%p855_p11, %s854_s20), 2 }
 0x32f   : > { %s1369_s22 = sshll.u32 %s1434_s20, 4 }
 0x330   : > { %s859_s14 = ssub.s32 32, %s1369_s22 }
 0x331   : > { %860 = vsyncadd %s1364_s13, %s859_s14  ;;  %p959_p12 = scmp.ne.s32.totalorder %s1369_s22, 0  ;;  %s1378_s16 = scalar_lea.hbm %s1426_s8, %s1210_s18 }
 0x332   : > { %s865_s24 = sshll.u32 %s341_s11, 4  ;;  %s1112_s25 = smov [#allocation3]   ;;  %s866_s24 = int_to_ptr.vmem [resolvable:$true] %s865_s24 }
 0x333   : > { %s1046_s7 = scalar_lea.vmem %s866_s24, %s1369_s22  ;;  %s1050_s26 = sshll.u32 %s1112_s25, 4  ;;  %s1051_s26 = int_to_ptr.vmem [resolvable:$false] %s1050_s26 }
 0x334   : > { %p1047_p13 = scmp.ne.s32.totalorder %s866_s24, %s1046_s7  ;;  %s1052_s27 = scalar_lea.vmem %s1051_s26, 64 }
 0x335   : > { %p1053_p2 = scmp.lt.s32.totalorder %s866_s24, %s1051_s26  ;;  %p1054_p3 = scmp.lt.s32.totalorder %s1052_s27, %s1046_s7 }
 0x336   : > { %p1048_p0 = pnand %p1047_p13, %p959_p12 }
 0x337   : > { %p1055_p4 = por %p1054_p3, %p1053_p2 }
 0x338   : > { %p1049_p1 = pneg %p1048_p0 }
 0x33a   : > { %p1056_p5 = pnand %p1055_p4, %p1049_p1 }
 0x33c   : > { %1059 = shalt.err (!%p1056_p5)
}
 0x33d   : > { %s1060_s18 = scalar_lea.hbm %s1378_s16, %s1369_s22  ;;  %s1064_s19 = scalar_lea.hbm %s1426_s8, 48 }
 0x33e   : > { %p1061_p7 = scmp.ne.s32.totalorder %s1378_s16, %s1060_s18  ;;  %p1065_p10 = scmp.lt.u32.totalorder %s1378_s16, %s1426_s8 }
 0x33f   : > { %p1066_p11 = scmp.lt.u32.totalorder %s1064_s19, %s1060_s18  ;;  %p1068_p0 = scmp.lt.u32.totalorder %s1060_s18, %s1378_s16 }
 0x340   : > { %p1062_p8 = pnand %p1061_p7, %p959_p12 }
 0x341   : > { %p1067_p13 = por %p1066_p11, %p1065_p10 }
 0x342   : > { %p1063_p9 = pneg %p1062_p8 }
 0x343   : > { %p1069_p1 = por %p1068_p0, %p1067_p13 }
 0x345   : > { %p1070_p2 = pnand %p1069_p1, %p1063_p9 }
 0x347   : > { %1073 = shalt.err (!%p1070_p2)
}
 0x348   : > { %868 = dma.vmem_to_hbm [thread:$0]  (%p959_p12), %s866_s24, %s1369_s22, %s1378_s16, %s1364_s13  }
 0x349 PF: > { %p997_p3 = scmp.ge.s32.totalorder %s1108_s10, 2  ;;  %s877_s21 = sand.u32 1, %s1096_s29  }
 0x34a   : > { %s878_s23 = scalar_lea.sflag [#allocation4], %s877_s21 }
 0x34b   : > { %p994_p4 = pnand %p997_p3, %p1203_p6 }
 0x34d   : > { %1091 = dma.done.wait (!%p994_p4), %s878_s23, 32  }
 0x34e   : > { %1093 = vsyncadd (!%p994_p4), %s878_s23, 4294967264  ;;  %p20_p5 = scmp.ge.s32.totalorder %s1186_s12, 4   ;;  %s1429_s29 = smov %s1100_s30 }
 0x34f   : > { %s1430_s30 = smov %s1104_s9  ;;  %s1431_s9 = smov %s1197_s15 }
 0x350   : > { %s1432_s10 = smov %s1186_s12  ;;  %22 = sbr.rel (!%p20_p5) target bundleno = 6 (0x6), region = 90 }
 0x357   :  { %883 = vsyncpa [#allocation4], 1 }
 0x358   :  { %885 = vsyncpa [#allocation4 + $0x1], 1 }

</bundles_post_ra>
